<compile_context>
chip_gen: v5e
topology: v5e:2x2
jax: 0.10.0
libtpu: 0.0.40
codegen_flags: <defaults>
</compile_context>

<pallas_src>
import jax
import jax.numpy as jnp
from jax.experimental import pallas as pl
from jax.experimental.pallas import tpu as pltpu

P_DROP = 0.2
# drop iff hashed bits < threshold  =>  P(keep) = 1 - p (exact up to 1/2^32)
_DROP_THRESHOLD_U32 = int(P_DROP * (1 << 32))


def _round_up(n, m):
    return ((n + m - 1) // m) * m


def _spec(shape, index_map, *, single_buffer=False):
    """BlockSpec helper; single_buffer=True requests 1-deep pipelining for blocks whose
    index never changes (resident weights/biases)."""
    if single_buffer and hasattr(pl, "Buffered"):
        try:
            return pl.BlockSpec(shape, index_map, pipeline_mode=pl.Buffered(1))
        except TypeError:
            pass
    return pl.BlockSpec(shape, index_map)


def _dropout_keep_mask(shape, row_offset, seed_u32):
    """Counter-based PRNG: keep-mask over a (rows, cols) tile.

    Deterministic in (global_row, col, seed); identical results regardless of batch
    tiling, and usable both inside the kernel and in a pure-JAX reference."""
    rows = (jax.lax.broadcasted_iota(jnp.int32, shape, 0) + row_offset).astype(jnp.uint32)
    cols = jax.lax.broadcasted_iota(jnp.int32, shape, 1).astype(jnp.uint32)
    v = (rows * jnp.uint32(0x9E3779B1)
         + cols * jnp.uint32(0x85EBCA77)
         + seed_u32 * jnp.uint32(0xC2B2AE3D))
    for _ in range(2):                      # two rounds of a splitmix32-style mixer
        v = v ^ (v >> 16)
        v = v * jnp.uint32(0x7FEB352D)
        v = v ^ (v >> 15)
        v = v * jnp.uint32(0x846CA68B)
        v = v ^ (v >> 16)
    return v >= jnp.uint32(_DROP_THRESHOLD_U32)


def mlp_kernel(seed_ref,               # SMEM scalar prefetch, (1,) int32
               x_ref,                  # (TB, in_size)   f32
               w1_ref, b1_ref,         # (in_size, U_P) bf16, (1, U_P) f32
               w2_ref, b2_ref,         # (U_P, U_P)     bf16, (1, U_P) f32
               w3_ref, b3_ref,         # (U_P, U_P)     bf16, (1, U_P) f32
               w4_ref, b4_ref,         # (U_P, out)     bf16, (1, out) f32
               o_ref):                 # (TB, out) f32
    # cast to bf16 in-kernel (VPU op hidden under MXU) instead of a wrapper HBM pass
    x = x_ref[...].astype(jnp.bfloat16)

    # fc_s -> relu   (bf16 operands, f32 accumulate)
    h = jnp.dot(x, w1_ref[...], preferred_element_type=jnp.float32) + b1_ref[...]
    h = jnp.maximum(h, 0.0)

    # fc2 -> relu
    h = jnp.dot(h.astype(jnp.bfloat16), w2_ref[...],
                preferred_element_type=jnp.float32) + b2_ref[...]
    h = jnp.maximum(h, 0.0)

    # dropout(p=0.2), F.dropout training=True semantics: drop w.p. p, scale kept by 1/(1-p)
    row_off = pl.program_id(0) * h.shape[0]          # global batch-row offset of this tile
    keep = _dropout_keep_mask(h.shape, row_off, seed_ref[0].astype(jnp.uint32))
    h = jnp.where(keep, h * (1.0 / (1.0 - P_DROP)), 0.0)

    # fc3 -> relu
    h = jnp.dot(h.astype(jnp.bfloat16), w3_ref[...],
                preferred_element_type=jnp.float32) + b3_ref[...]
    h = jnp.maximum(h, 0.0)

    # fc_e (no activation)
    out = jnp.dot(h.astype(jnp.bfloat16), w4_ref[...],
                  preferred_element_type=jnp.float32) + b4_ref[...]
    o_ref[...] = out.astype(o_ref.dtype)


def net_forward(x, params, seed, *, tb=None):
    """x: (B, input_size) f32; params: dict of (W, b) per layer in PyTorch convention
    (W is (out, in)); seed: int for the dropout PRNG."""
    (w1, b1), (w2, b2), (w3, b3), (w4, b4) = (
        params["fc_s"], params["fc2"], params["fc3"], params["fc_e"])

    B, in_size = x.shape
    unit_size = w1.shape[0]
    out_size = w4.shape[0]

    # hidden dim padded to a lane-dense multiple of 128 (zero pad is exact: padded
    # columns stay 0 through relu/dropout and hit zero rows of the next weight)
    U_P = _round_up(unit_size, 128)

    # batch tile: multiple of 8 for sublane alignment; tunable.
    # TODO(synk): sweep tb in {256, 512, 1024} for large B / small unit_size.
    TB = tb if tb is not None else min(512, _round_up(B, 8))
    if tb is None and B >= 16 and pl.cdiv(B, TB) < 2:
        TB = _round_up(pl.cdiv(B, 2), 8)   # >= 2 tiles so v7x megacore shards the batch
    n_tiles = pl.cdiv(B, TB)

    def pad2(a, rows, cols):
        a = jnp.asarray(a, jnp.float32)
        return jnp.pad(a, ((0, rows - a.shape[0]), (0, cols - a.shape[1])))

    # pre-transpose weights to (in, out); pad hidden dims; bf16 for the MXU operands
    x = jnp.asarray(x, jnp.float32)
    w1_p = pad2(w1.T, in_size, U_P).astype(jnp.bfloat16)
    w2_p = pad2(w2.T, U_P, U_P).astype(jnp.bfloat16)
    w3_p = pad2(w3.T, U_P, U_P).astype(jnp.bfloat16)
    w4_p = pad2(w4.T, U_P, out_size).astype(jnp.bfloat16)
    b1_p = pad2(b1.reshape(1, -1), 1, U_P)
    b2_p = pad2(b2.reshape(1, -1), 1, U_P)
    b3_p = pad2(b3.reshape(1, -1), 1, U_P)
    b4_p = jnp.asarray(b4, jnp.float32).reshape(1, out_size)

    seed_arr = jnp.asarray([seed], dtype=jnp.int32)

    rep = lambda i, s: (0, 0)   # weights / biases resident across batch tiles

    in_specs = [
        pl.BlockSpec((TB, in_size), lambda i, s: (i, 0)),            # x (double-buffered)
        _spec((in_size, U_P), rep, single_buffer=True),
        _spec((1, U_P), rep, single_buffer=True),
        _spec((U_P, U_P), rep, single_buffer=True),
        _spec((1, U_P), rep, single_buffer=True),
        _spec((U_P, U_P), rep, single_buffer=True),
        _spec((1, U_P), rep, single_buffer=True),
        _spec((U_P, out_size), rep, single_buffer=True),
        _spec((1, out_size), rep, single_buffer=True),
    ]
    out_specs = pl.BlockSpec((TB, out_size), lambda i, s: (i, 0))

    # VMEM budget: resident weights (single-buffered) + double-buffered x/out tiles +
    # headroom for live f32 intermediates.
    weight_bytes = 2 * (w1_p.size + w2_p.size + w3_p.size + w4_p.size)
    bias_bytes = 4 * (b1_p.size + b2_p.size + b3_p.size + b4_p.size)
    io_tile_bytes = 2 * (TB * in_size * 4 + TB * out_size * 4)
    act_bytes = 6 * TB * U_P * 4
    needed = weight_bytes + bias_bytes + io_tile_bytes + act_bytes + (2 << 20)
    vmem_limit = int(min(max(needed, 32 << 20), 100 << 20))

    flops = 2 * B * (in_size * U_P + 2 * U_P * U_P + U_P * out_size)
    bytes_accessed = x.size * 4 + B * out_size * 4 + weight_bytes + bias_bytes

    out = pl.pallas_call(
        mlp_kernel,
        out_shape=jax.ShapeDtypeStruct((B, out_size), jnp.float32),
        grid_spec=pltpu.PrefetchScalarGridSpec(
            num_scalar_prefetch=1,
            grid=(n_tiles,),
            in_specs=in_specs,
            out_specs=out_specs,
        ),
        compiler_params=pltpu.CompilerParams(
            dimension_semantics=("parallel",),
            vmem_limit_bytes=vmem_limit,
        ),
        cost_estimate=pl.CostEstimate(
            flops=flops, transcendentals=0, bytes_accessed=bytes_accessed),
    )(seed_arr, x, w1_p, b1_p, w2_p, b2_p, w3_p, b3_p, w4_p, b4_p)
    return out
    # TODO(synk): for padded unit_size >~ 2.5k the whole-weights-resident design exceeds
    # v7x's 64 MiB VMEM; add a K-tiled reduction grid axis (acc scratch + pl.when
    # init/finalize) or split layers 1-2 / 3-4 into two pallas_calls.


def init_params(key, input_size, output_size, unit_size):
    """Deterministic init mimicking nn.Linear's U(-1/sqrt(fan_in), 1/sqrt(fan_in))."""
    def linear(k, fan_in, fan_out):
        kw, kb = jax.random.split(k)
        bound = 1.0 / jnp.sqrt(jnp.float32(fan_in))
        w = jax.random.uniform(kw, (fan_out, fan_in), jnp.float32, -bound, bound)
        b = jax.random.uniform(kb, (fan_out,), jnp.float32, -bound, bound)
        return w, b

    k1, k2, k3, k4 = jax.random.split(key, 4)
    return {
        "fc_s": linear(k1, input_size, unit_size),
        "fc2":  linear(k2, unit_size, unit_size),
        "fc3":  linear(k3, unit_size, unit_size),
        "fc_e": linear(k4, unit_size, output_size),
    }


def ref_forward(x, params, seed, unit_size):
    """Pure-JAX f32 reference using the exact same dropout mask as the kernel."""
    (w1, b1), (w2, b2), (w3, b3), (w4, b4) = (
        params["fc_s"], params["fc2"], params["fc3"], params["fc_e"])
    h = jnp.maximum(x @ w1.T + b1, 0.0)
    h = jnp.maximum(h @ w2.T + b2, 0.0)
    U_P = _round_up(unit_size, 128)
    keep = _dropout_keep_mask((x.shape[0], U_P), 0, jnp.uint32(seed))[:, :unit_size]
    h = jnp.where(keep, h * (1.0 / (1.0 - P_DROP)), 0.0)
    h = jnp.maximum(h @ w3.T + b3, 0.0)
    return h @ w4.T + b4


if __name__ == "__main__":
    input_size, output_size, unit_size = 16, 8, 32
    batch = 8

    key = jax.random.PRNGKey(0)
    kp, kx = jax.random.split(key)
    params = init_params(kp, input_size, output_size, unit_size)
    x = jax.random.normal(kx, (batch, input_size), dtype=jnp.float32)

    y = net_forward(x, params, seed=0)
    jax.block_until_ready(y)
    assert y.shape == (batch, output_size)
    assert bool(jnp.all(jnp.isfinite(y)))

    # correctness vs. pure-JAX reference with the identical dropout mask (kernel uses
    # bf16 matmul operands with f32 accumulation -> loose tolerance)
    y_ref = ref_forward(x, params, 0, unit_size)
    assert bool(jnp.allclose(y, y_ref, rtol=5e-2, atol=5e-2)), "mismatch vs reference"

    print("KERNEL_OK")
</pallas_src>

<mosaic_0001>
module attributes {stable_mosaic.version = 11 : i64} {
  func.func @mlp_kernel(%arg0: i32, %arg1: memref<1xi32, #tpu.memory_space<smem>>, %arg2: memref<8x16xf32, #tpu.memory_space<vmem>>, %arg3: memref<16x128xbf16, #tpu.memory_space<vmem>>, %arg4: memref<1x128xf32, #tpu.memory_space<vmem>>, %arg5: memref<128x128xbf16, #tpu.memory_space<vmem>>, %arg6: memref<1x128xf32, #tpu.memory_space<vmem>>, %arg7: memref<128x128xbf16, #tpu.memory_space<vmem>>, %arg8: memref<1x128xf32, #tpu.memory_space<vmem>>, %arg9: memref<128x8xbf16, #tpu.memory_space<vmem>>, %arg10: memref<1x8xf32, #tpu.memory_space<vmem>>, %arg11: memref<8x8xf32, #tpu.memory_space<vmem>>) attributes {dimension_semantics = [#tpu.dimension_semantics<parallel>], iteration_bounds = array<i64: 1>, scalar_prefetch = 1 : i64, scratch_operands = 0 : i64, tpu.core_type = #tpu.core_type<tc>, window_params = [{transform_indices = @transform_0, window_bounds = array<i64: 8, 16>}, {pipeline_mode = #tpu.pipeline_mode<synchronous>, transform_indices = @transform_1, window_bounds = array<i64: 16, 128>}, {pipeline_mode = #tpu.pipeline_mode<synchronous>, transform_indices = @transform_2, window_bounds = array<i64: 1, 128>}, {pipeline_mode = #tpu.pipeline_mode<synchronous>, transform_indices = @transform_3, window_bounds = array<i64: 128, 128>}, {pipeline_mode = #tpu.pipeline_mode<synchronous>, transform_indices = @transform_4, window_bounds = array<i64: 1, 128>}, {pipeline_mode = #tpu.pipeline_mode<synchronous>, transform_indices = @transform_5, window_bounds = array<i64: 128, 128>}, {pipeline_mode = #tpu.pipeline_mode<synchronous>, transform_indices = @transform_6, window_bounds = array<i64: 1, 128>}, {pipeline_mode = #tpu.pipeline_mode<synchronous>, transform_indices = @transform_7, window_bounds = array<i64: 128, 8>}, {pipeline_mode = #tpu.pipeline_mode<synchronous>, transform_indices = @transform_8, window_bounds = array<i64: 1, 8>}, {transform_indices = @transform_9, window_bounds = array<i64: 8, 8>}]} {
    %c0 = arith.constant 0 : index
    %c0_0 = arith.constant 0 : index
    %0 = vector.load %arg2[%c0, %c0_0] : memref<8x16xf32, #tpu.memory_space<vmem>>, vector<8x16xf32>
    %1 = arith.truncf %0 : vector<8x16xf32> to vector<8x16xbf16>
    %c0_1 = arith.constant 0 : index
    %c0_2 = arith.constant 0 : index
    %2 = vector.load %arg3[%c0_1, %c0_2] : memref<16x128xbf16, #tpu.memory_space<vmem>>, vector<16x128xbf16>
    %cst = arith.constant dense<0.000000e+00> : vector<8x128xf32>
    %3 = tpu.matmul %1, %2, %cst {dimension_numbers = #tpu.dot_dimension_numbers<[1], [0], [0], [1], [0, 0, 1, 1], [], []>} : vector<8x16xbf16>, vector<16x128xbf16>, vector<8x128xf32> -> vector<8x128xf32>
    %c0_3 = arith.constant 0 : index
    %c0_4 = arith.constant 0 : index
    %4 = vector.load %arg4[%c0_3, %c0_4] : memref<1x128xf32, #tpu.memory_space<vmem>>, vector<1x128xf32>
    %5 = vector.broadcast %4 : vector<1x128xf32> to vector<8x128xf32>
    %6 = arith.addf %3, %5 : vector<8x128xf32>
    %cst_5 = arith.constant 0.000000e+00 : f32
    %7 = vector.broadcast %cst_5 : f32 to vector<8x128xf32>
    %8 = arith.maximumf %6, %7 : vector<8x128xf32>
    %9 = arith.truncf %8 : vector<8x128xf32> to vector<8x128xbf16>
    %c0_6 = arith.constant 0 : index
    %c0_7 = arith.constant 0 : index
    %10 = vector.load %arg5[%c0_6, %c0_7] : memref<128x128xbf16, #tpu.memory_space<vmem>>, vector<128x128xbf16>
    %cst_8 = arith.constant dense<0.000000e+00> : vector<8x128xf32>
    %11 = tpu.matmul %9, %10, %cst_8 {dimension_numbers = #tpu.dot_dimension_numbers<[1], [0], [0], [1], [0, 0, 1, 1], [], []>} : vector<8x128xbf16>, vector<128x128xbf16>, vector<8x128xf32> -> vector<8x128xf32>
    %c0_9 = arith.constant 0 : index
    %c0_10 = arith.constant 0 : index
    %12 = vector.load %arg6[%c0_9, %c0_10] : memref<1x128xf32, #tpu.memory_space<vmem>>, vector<1x128xf32>
    %13 = vector.broadcast %12 : vector<1x128xf32> to vector<8x128xf32>
    %14 = arith.addf %11, %13 : vector<8x128xf32>
    %cst_11 = arith.constant 0.000000e+00 : f32
    %15 = vector.broadcast %cst_11 : f32 to vector<8x128xf32>
    %16 = arith.maximumf %14, %15 : vector<8x128xf32>
    %c8_i32 = arith.constant 8 : i32
    %17 = arith.muli %arg0, %c8_i32 : i32
    %c0_12 = arith.constant 0 : index
    %18 = memref.load %arg1[%c0_12] : memref<1xi32, #tpu.memory_space<smem>>
    %19 = tpu.iota {dimensions = array<i32: 0>} : vector<8x128xi32>
    %20 = vector.broadcast %17 : i32 to vector<8x128xi32>
    %21 = arith.addi %19, %20 : vector<8x128xi32>
    %22 = tpu.iota {dimensions = array<i32: 1>} : vector<8x128xi32>
    %c-1640531535_i32 = arith.constant -1640531535 : i32
    %23 = vector.broadcast %c-1640531535_i32 : i32 to vector<8x128xi32>
    %24 = arith.muli %21, %23 : vector<8x128xi32>
    %c-2048144777_i32 = arith.constant -2048144777 : i32
    %25 = vector.broadcast %c-2048144777_i32 : i32 to vector<8x128xi32>
    %26 = arith.muli %22, %25 : vector<8x128xi32>
    %27 = arith.addi %24, %26 : vector<8x128xi32>
    %c-1028477379_i32 = arith.constant -1028477379 : i32
    %28 = arith.muli %18, %c-1028477379_i32 : i32
    %29 = vector.broadcast %28 : i32 to vector<8x128xi32>
    %30 = arith.addi %27, %29 : vector<8x128xi32>
    %c16_i32 = arith.constant 16 : i32
    %31 = vector.broadcast %c16_i32 : i32 to vector<8x128xi32>
    %32 = arith.shrui %30, %31 : vector<8x128xi32>
    %33 = arith.xori %30, %32 : vector<8x128xi32>
    %c2146121005_i32 = arith.constant 2146121005 : i32
    %34 = vector.broadcast %c2146121005_i32 : i32 to vector<8x128xi32>
    %35 = arith.muli %33, %34 : vector<8x128xi32>
    %c15_i32 = arith.constant 15 : i32
    %36 = vector.broadcast %c15_i32 : i32 to vector<8x128xi32>
    %37 = arith.shrui %35, %36 : vector<8x128xi32>
    %38 = arith.xori %35, %37 : vector<8x128xi32>
    %c-2073254261_i32 = arith.constant -2073254261 : i32
    %39 = vector.broadcast %c-2073254261_i32 : i32 to vector<8x128xi32>
    %40 = arith.muli %38, %39 : vector<8x128xi32>
    %c16_i32_13 = arith.constant 16 : i32
    %41 = vector.broadcast %c16_i32_13 : i32 to vector<8x128xi32>
    %42 = arith.shrui %40, %41 : vector<8x128xi32>
    %43 = arith.xori %40, %42 : vector<8x128xi32>
    %c16_i32_14 = arith.constant 16 : i32
    %44 = vector.broadcast %c16_i32_14 : i32 to vector<8x128xi32>
    %45 = arith.shrui %43, %44 : vector<8x128xi32>
    %46 = arith.xori %43, %45 : vector<8x128xi32>
    %c2146121005_i32_15 = arith.constant 2146121005 : i32
    %47 = vector.broadcast %c2146121005_i32_15 : i32 to vector<8x128xi32>
    %48 = arith.muli %46, %47 : vector<8x128xi32>
    %c15_i32_16 = arith.constant 15 : i32
    %49 = vector.broadcast %c15_i32_16 : i32 to vector<8x128xi32>
    %50 = arith.shrui %48, %49 : vector<8x128xi32>
    %51 = arith.xori %48, %50 : vector<8x128xi32>
    %c-2073254261_i32_17 = arith.constant -2073254261 : i32
    %52 = vector.broadcast %c-2073254261_i32_17 : i32 to vector<8x128xi32>
    %53 = arith.muli %51, %52 : vector<8x128xi32>
    %c16_i32_18 = arith.constant 16 : i32
    %54 = vector.broadcast %c16_i32_18 : i32 to vector<8x128xi32>
    %55 = arith.shrui %53, %54 : vector<8x128xi32>
    %56 = arith.xori %53, %55 : vector<8x128xi32>
    %c858993459_i32 = arith.constant 858993459 : i32
    %57 = vector.broadcast %c858993459_i32 : i32 to vector<8x128xi32>
    %58 = arith.cmpi uge, %56, %57 : vector<8x128xi32>
    %cst_19 = arith.constant 1.250000e+00 : f32
    %59 = vector.broadcast %cst_19 : f32 to vector<8x128xf32>
    %60 = arith.mulf %16, %59 : vector<8x128xf32>
    %cst_20 = arith.constant 0.000000e+00 : f32
    %61 = vector.broadcast %cst_20 : f32 to vector<8x128xf32>
    %62 = arith.select %58, %60, %61 : vector<8x128xi1>, vector<8x128xf32>
    %63 = arith.truncf %62 : vector<8x128xf32> to vector<8x128xbf16>
    %c0_21 = arith.constant 0 : index
    %c0_22 = arith.constant 0 : index
    %64 = vector.load %arg7[%c0_21, %c0_22] : memref<128x128xbf16, #tpu.memory_space<vmem>>, vector<128x128xbf16>
    %cst_23 = arith.constant dense<0.000000e+00> : vector<8x128xf32>
    %65 = tpu.matmul %63, %64, %cst_23 {dimension_numbers = #tpu.dot_dimension_numbers<[1], [0], [0], [1], [0, 0, 1, 1], [], []>} : vector<8x128xbf16>, vector<128x128xbf16>, vector<8x128xf32> -> vector<8x128xf32>
    %c0_24 = arith.constant 0 : index
    %c0_25 = arith.constant 0 : index
    %66 = vector.load %arg8[%c0_24, %c0_25] : memref<1x128xf32, #tpu.memory_space<vmem>>, vector<1x128xf32>
    %67 = vector.broadcast %66 : vector<1x128xf32> to vector<8x128xf32>
    %68 = arith.addf %65, %67 : vector<8x128xf32>
    %cst_26 = arith.constant 0.000000e+00 : f32
    %69 = vector.broadcast %cst_26 : f32 to vector<8x128xf32>
    %70 = arith.maximumf %68, %69 : vector<8x128xf32>
    %71 = arith.truncf %70 : vector<8x128xf32> to vector<8x128xbf16>
    %c0_27 = arith.constant 0 : index
    %c0_28 = arith.constant 0 : index
    %72 = vector.load %arg9[%c0_27, %c0_28] : memref<128x8xbf16, #tpu.memory_space<vmem>>, vector<128x8xbf16>
    %cst_29 = arith.constant dense<0.000000e+00> : vector<8x8xf32>
    %73 = tpu.matmul %71, %72, %cst_29 {dimension_numbers = #tpu.dot_dimension_numbers<[1], [0], [0], [1], [0, 0, 1, 1], [], []>} : vector<8x128xbf16>, vector<128x8xbf16>, vector<8x8xf32> -> vector<8x8xf32>
    %c0_30 = arith.constant 0 : index
    %c0_31 = arith.constant 0 : index
    %74 = vector.load %arg10[%c0_30, %c0_31] : memref<1x8xf32, #tpu.memory_space<vmem>>, vector<1x8xf32>
    %75 = vector.broadcast %74 : vector<1x8xf32> to vector<8x8xf32>
    %76 = arith.addf %73, %75 : vector<8x8xf32>
    %c0_32 = arith.constant 0 : index
    %c0_33 = arith.constant 0 : index
    %77 = vector.load %arg11[%c0_32, %c0_33] : memref<8x8xf32, #tpu.memory_space<vmem>>, vector<8x8xf32>
    tpu.vector_store %arg11[%c0_32, %c0_33], %76 {strides = array<i32>} : memref<8x8xf32, #tpu.memory_space<vmem>>, vector<8x8xf32>,
    return
  }
  func.func @transform_0(%arg0: i32, %arg1: memref<1xi32, #tpu.memory_space<smem>>) -> (i32, i32) {
    %c0_i32 = arith.constant 0 : i32
    %c0_i32_0 = arith.constant 0 : i32
    return %arg0, %c0_i32 : i32, i32
  }
  func.func @transform_1(%arg0: i32, %arg1: memref<1xi32, #tpu.memory_space<smem>>) -> (i32, i32) {
    %c0_i32 = arith.constant 0 : i32
    %c0_i32_0 = arith.constant 0 : i32
    %c0_i32_1 = arith.constant 0 : i32
    return %c0_i32, %c0_i32_0 : i32, i32
  }
  func.func @transform_2(%arg0: i32, %arg1: memref<1xi32, #tpu.memory_space<smem>>) -> (i32, i32) {
    %c0_i32 = arith.constant 0 : i32
    %c0_i32_0 = arith.constant 0 : i32
    %c0_i32_1 = arith.constant 0 : i32
    return %c0_i32, %c0_i32_0 : i32, i32
  }
  func.func @transform_3(%arg0: i32, %arg1: memref<1xi32, #tpu.memory_space<smem>>) -> (i32, i32) {
    %c0_i32 = arith.constant 0 : i32
    %c0_i32_0 = arith.constant 0 : i32
    %c0_i32_1 = arith.constant 0 : i32
    return %c0_i32, %c0_i32_0 : i32, i32
  }
  func.func @transform_4(%arg0: i32, %arg1: memref<1xi32, #tpu.memory_space<smem>>) -> (i32, i32) {
    %c0_i32 = arith.constant 0 : i32
    %c0_i32_0 = arith.constant 0 : i32
    %c0_i32_1 = arith.constant 0 : i32
    return %c0_i32, %c0_i32_0 : i32, i32
  }
  func.func @transform_5(%arg0: i32, %arg1: memref<1xi32, #tpu.memory_space<smem>>) -> (i32, i32) {
    %c0_i32 = arith.constant 0 : i32
    %c0_i32_0 = arith.constant 0 : i32
    %c0_i32_1 = arith.constant 0 : i32
    return %c0_i32, %c0_i32_0 : i32, i32
  }
  func.func @transform_6(%arg0: i32, %arg1: memref<1xi32, #tpu.memory_space<smem>>) -> (i32, i32) {
    %c0_i32 = arith.constant 0 : i32
    %c0_i32_0 = arith.constant 0 : i32
    %c0_i32_1 = arith.constant 0 : i32
    return %c0_i32, %c0_i32_0 : i32, i32
  }
  func.func @transform_7(%arg0: i32, %arg1: memref<1xi32, #tpu.memory_space<smem>>) -> (i32, i32) {
    %c0_i32 = arith.constant 0 : i32
    %c0_i32_0 = arith.constant 0 : i32
    %c0_i32_1 = arith.constant 0 : i32
    return %c0_i32, %c0_i32_0 : i32, i32
  }
  func.func @transform_8(%arg0: i32, %arg1: memref<1xi32, #tpu.memory_space<smem>>) -> (i32, i32) {
    %c0_i32 = arith.constant 0 : i32
    %c0_i32_0 = arith.constant 0 : i32
    %c0_i32_1 = arith.constant 0 : i32
    return %c0_i32, %c0_i32_0 : i32, i32
  }
  func.func @transform_9(%arg0: i32, %arg1: memref<1xi32, #tpu.memory_space<smem>>) -> (i32, i32) {
    %c0_i32 = arith.constant 0 : i32
    %c0_i32_0 = arith.constant 0 : i32
    return %arg0, %c0_i32 : i32, i32
  }
}

</mosaic_0001>

<bundles_post_ra>
// kernel: tpu_custom_call.1
= control target key start
LH: loop header
LB: loop body
LE: loop exit
PB: predicated region body
PF: predicated region fallthrough
CT: control target
= control target key end

     0   :  { %16 = vsyncpa [#allocation5], 0  ;;  %s876_s0 = inlined_call_operand.<no memory space> [shape: s32[1], index: 0, kind: input, shape index: {}]   ;;  %s877_s1 = inlined_call_operand.vmem [shape: f32[8,16], index: 1, kind: input, shape index: {}]   ;;  %s878_s2 = inlined_call_operand.hbm [shape: bf16[16,128], index: 2, kind: input, shape index: {}]   ;;  %s879_s3 = inlined_call_operand.hbm [shape: f32[1,128], index: 3, kind: input, shape index: {}]   ;;  %s880_s4 = inlined_call_operand.vmem [shape: bf16[128,128], index: 4, kind: input, shape index: {}]   ;;  %s881_s5 = inlined_call_operand.hbm [shape: f32[1,128], index: 5, kind: input, shape index: {}]   ;;  %s882_s6 = inlined_call_operand.hbm [shape: bf16[128,128], index: 6, kind: input, shape index: {}]   ;;  %s883_s7 = inlined_call_operand.hbm [shape: f32[1,128], index: 7, kind: input, shape index: {}]   ;;  %s884_s8 = inlined_call_operand.vmem [shape: bf16[128,8], index: 8, kind: input, shape index: {}]   ;;  %s885_s9 = inlined_call_operand.vmem [shape: f32[1,8], index: 9, kind: input, shape index: {}]   ;;  %s886_s10 = inlined_call_operand.hbm [shape: f32[8,8], index: 10, kind: output, shape index: {}]  }
   0x1   :  { %17 = vsyncpa [#allocation8], 0 }
   0x2   :  { %18 = vsyncpa [#allocation11], 0  ;;  %s40_s15 = sshll.u32 %s879_s3, 4  ;;  %s41_s15 = int_to_ptr.hbm [resolvable:$true] %s40_s15 }
   0x3   :  { %19 = vsyncpa [#allocation6], 0  ;;  %s738_s16 = smov [#allocation7]   ;;  %s63_s20 = sshll.u32 %s882_s6, 4  ;;  %s64_s20 = int_to_ptr.hbm [resolvable:$true] %s63_s20 }
   0x4   :  { %s42_s17 = sshll.u32 %s738_s16, 4  ;;  %s739_s21 = smov [#allocation10]   ;;  %s43_s17 = int_to_ptr.vmem [resolvable:$true] %s42_s17 }
   0x5   :  { %45 = dma.hbm_to_vmem [thread:$0]  %s41_s15, 16, %s43_s17, [#allocation8]  }
   0x6   :  { %s65_s22 = sshll.u32 %s739_s21, 4  ;;  %s26_s25 = sshll.u32 %s878_s2, 4  ;;  %s66_s22 = int_to_ptr.vmem [resolvable:$true] %s65_s22  ;;  %s27_s25 = int_to_ptr.hbm [resolvable:$true] %s26_s25 }
   0x7   :  { %s740_s3 = smov 64   ;;  %s741_s26 = smov 4  }
   0x8   :  { %71 = dma.hbm_to_vmem [thread:$0]  %s64_s20, 1024, %s66_s22, [#allocation11], %s740_s3, %s740_s3, %s741_s26  }
   0x9   :  { %s53_s29 = sshll.u32 %s881_s5, 4  ;;  %s742_s30 = smov [#allocation4]   ;;  %s54_s29 = int_to_ptr.hbm [resolvable:$true] %s53_s29 }
   0xa   :  { %s28_s11 = sshll.u32 %s742_s30, 4  ;;  %s743_s6 = smov [#allocation9]   ;;  %s29_s11 = int_to_ptr.vmem [resolvable:$true] %s28_s11 }
   0xb   :  { %34 = dma.hbm_to_vmem [thread:$0]  %s27_s25, 128, %s29_s11, [#allocation5], %s740_s3, %s740_s3, %s741_s26  }
   0xc   :  { %s55_s12 = sshll.u32 %s743_s6, 4  ;;  %s77_s2 = sshll.u32 %s883_s7, 4  ;;  %s56_s12 = int_to_ptr.vmem [resolvable:$true] %s55_s12  ;;  %s78_s2 = int_to_ptr.hbm [resolvable:$true] %s77_s2 }
   0xd   :  { %58 = dma.hbm_to_vmem [thread:$0]  %s54_s29, 16, %s56_s12, [#allocation8]  }
   0xe   :  { %s744_s15 = smov [#allocation12]  }
   0xf   :  { %s79_s16 = sshll.u32 %s744_s15, 4  ;;  %s80_s16 = int_to_ptr.vmem [resolvable:$true] %s79_s16 }
  0x10   :  { %82 = dma.hbm_to_vmem [thread:$0]  %s78_s2, 16, %s80_s16, [#allocation11]  }
  0x11   :  { %730 = dma.done.wait [#allocation5], 128  }
  0x12   :  { %731 = vsyncadd [#allocation5], 4294967168 }
  0x13   :  { %732 = dma.done.wait [#allocation8], 32  }
  0x14   :  { %733 = vsyncadd [#allocation8], 4294967264 }
  0x15   :  { %734 = dma.done.wait [#allocation11], 1040  }
  0x16   :  { %735 = vsyncadd [#allocation11], 4294966256  ;;  %v549_v0 = vld [vmem:[#allocation4] sm:$0xff]  ;;  %v557_v2 = vld [vmem:[%s880_s4 + $0x38] sm:$0xff]  ;;  %vm122_vm0 = vcmask 130048   ;;  %v225_v23 = vlaneseq  ;;  %s745_s25 = smov [#allocation13]  }
  0x17   :  { %v108_v1 = vld [vmem:[%s877_s1] sm:$0xff]  ;;  %133 = vmatpush.bf16.msra.mxu0 %v549_v0  ;;  %209 = vmatpush.bf16.msra.mxu1 %v557_v2  ;;  %v556_v4 = vld [vmem:[%s880_s4 + $0x30] sm:$0xff]  ;;  %v555_v5 = vld [vmem:[%s880_s4 + $0x28] sm:$0xff]  ;;  %s234_s6 = smul.u32 3266489917, %s876_s0  ;;  %s430_s3 = sshll.u32 %s745_s25, 4  ;;  %s431_s3 = int_to_ptr.vmem [resolvable:$true] %s430_s3 }
  0x18   :  { %v109_v3 = vpack.c.bf16 %v108_v1, %v108_v1  ;;  %v554_v6 = vld [vmem:[%s880_s4 + $0x20] sm:$0xff]  ;;  %v553_v7 = vld [vmem:[%s880_s4 + $0x18] sm:$0xff]  ;;  %v552_v8 = vld [vmem:[%s880_s4 + $0x10] sm:$0xff]  ;;  %v226_v24 = vshrl.u32 %v225_v23, 7  ;;  %v230_v25 = vand.u32 127, %v225_v23  ;;  %s432_s28 = sshll.u32 %s886_s10, 4  ;;  %s433_s28 = int_to_ptr.hbm [resolvable:$true] %s432_s28 }
  0x19   :  { %v551_v9 = vld [vmem:[%s880_s4 + $0x8] sm:$0xff]  ;;  %v550_v10 = vld [vmem:[%s880_s4] sm:$0xff]  ;;  %v563_v13 = vld [vmem:[#allocation10 + $0x28] sm:$0xff]  ;;  %v235_v29 = vstv %s234_s6  ;;  %vm423_vm3 = vcmask 64512  }
  0x1a   :  { %448 = vmatmul.msk.bf16.vlgmr.msra.gmra.mxu0 %vm122_vm0, %v109_v3  ;;  %v565_v11 = vld [vmem:[#allocation10 + $0x38] sm:$0xff]  ;;  %v564_v12 = vld [vmem:[#allocation10 + $0x30] sm:$0xff]  ;;  %v562_v14 = vld [vmem:[#allocation10 + $0x20] sm:$0xff]  ;;  %v231_v26 = vmul.u32 2654435761, %v226_v24 }
  0x1b   :  { %210 = vmatpush.bf16.msra.mxu1 %v556_v4  ;;  %327 = vmatpush.bf16.msra.mxu2 %v565_v11  ;;  %v561_v15 = vld [vmem:[#allocation10 + $0x18] sm:$0xff]  ;;  %v560_v16 = vld [vmem:[#allocation10 + $0x10] sm:$0xff]  ;;  %v232_v27 = vmul.u32 2246822519, %v230_v25  ;;  %v559_v40 = vld [vmem:[#allocation10 + $0x8] sm:$0xff] }
  0x1c   :  { %v582_v17 = vld [vmem:[#allocation7] ss:$0 sm:$0xff]  ;;  %v558_v42 = vld [vmem:[#allocation10] sm:$0xff]  ;;  %v573_v44 = vld [vmem:[%s884_s8 + $0x38] sm:$0xff] }
  0x1d   :  { %v233_v28 = vadd.s32 %v232_v27, %v231_v26  ;;  %410 = vmatpush.bf16.msra.mxu3 %v573_v44  ;;  %v572_v46 = vld [vmem:[%s884_s8 + $0x30] sm:$0xff]  ;;  %v571_v48 = vld [vmem:[%s884_s8 + $0x28] sm:$0xff]  ;;  %v570_v50 = vld [vmem:[%s884_s8 + $0x20] sm:$0xff] }
  0x1e   :  { %v569_v52 = vld [vmem:[%s884_s8 + $0x18] sm:$0xff]  ;;  %v568_v54 = vld [vmem:[%s884_s8 + $0x10] sm:$0xff]  ;;  %v583_v55 = vld [vmem:[#allocation9] ss:$0 sm:$0xff] }
  0x1f   :  { %211 = vmatpush.bf16.msra.mxu1 %v555_v5  ;;  %328 = vmatpush.bf16.msra.mxu2 %v564_v12  ;;  %v236_v30 = vadd.s32 %v235_v29, %v233_v28  ;;  %v567_v63 = vld [vmem:[%s884_s8 + $0x8] sm:$0xff]  ;;  %v566_v0 = vld [vmem:[%s884_s8] sm:$0xff] }
  0x20   :  { %v584_v1 = vld [vmem:[#allocation12] ss:$0 sm:$0xff] }
  0x21   :  { %v237_v31 = vshrl.u32 %v236_v30, 16  ;;  %411 = vmatpush.bf16.msra.mxu3 %v572_v46 }
  0x23   :  { %212 = vmatpush.bf16.msra.mxu1 %v554_v6  ;;  %329 = vmatpush.bf16.msra.mxu2 %v563_v13  ;;  %v238_v32 = vxor.u32 %v237_v31, %v236_v30 }
  0x25   :  { %v239_v33 = vmul.u32 2146121005, %v238_v32  ;;  %412 = vmatpush.bf16.msra.mxu3 %v571_v48 }
  0x27   :  { %213 = vmatpush.bf16.msra.mxu1 %v553_v7  ;;  %330 = vmatpush.bf16.msra.mxu2 %v562_v14  ;;  %v240_v34 = vshrl.u32 %v239_v33, 15  ;;  %v585_v7 = vld [vmem:[%s885_s9] ss:$0 sm:$0xff] }
  0x29   :  { %v241_v35 = vxor.u32 %v240_v34, %v239_v33  ;;  %413 = vmatpush.bf16.msra.mxu3 %v570_v50 }
  0x2b   :  { %214 = vmatpush.bf16.msra.mxu1 %v552_v8  ;;  %331 = vmatpush.bf16.msra.mxu2 %v561_v15  ;;  %v242_v36 = vmul.u32 2221713035, %v241_v35 }
  0x2d   :  { %v243_v37 = vshrl.u32 %v242_v36, 16  ;;  %414 = vmatpush.bf16.msra.mxu3 %v569_v52 }
  0x2f   :  { %215 = vmatpush.bf16.msra.mxu1 %v551_v9  ;;  %332 = vmatpush.bf16.msra.mxu2 %v560_v16  ;;  %v244_v38 = vxor.u32 %v243_v37, %v242_v36 }
  0x31   :  { %v245_v39 = vshrl.u32 %v244_v38, 16  ;;  %415 = vmatpush.bf16.msra.mxu3 %v568_v54 }
  0x33   :  { %216 = vmatpush.bf16.msra.mxu1 %v550_v10  ;;  %333 = vmatpush.bf16.msra.mxu2 %v559_v40  ;;  %v246_v41 = vxor.u32 %v245_v39, %v244_v38 }
  0x35   :  { %v247_v43 = vmul.u32 2146121005, %v246_v41  ;;  %416 = vmatpush.bf16.msra.mxu3 %v567_v63 }
  0x37   :  { %334 = vmatpush.bf16.msra.mxu2 %v558_v42  ;;  %v248_v45 = vshrl.u32 %v247_v43, 15 }
  0x39   :  { %v249_v47 = vxor.u32 %v248_v45, %v247_v43  ;;  %417 = vmatpush.bf16.msra.mxu3 %v566_v0 }
  0x3b   :  { %v250_v49 = vmul.u32 2221713035, %v249_v47 }
  0x3d   :  { %v251_v51 = vshrl.u32 %v250_v49, 16 }
  0x3f   :  { %v252_v53 = vxor.u32 %v251_v51, %v250_v49 }
  0x41   :  { %v481_v56 = vxor.u32 2147483648, %v252_v53 }
  0x43   :  { %vm255_vm1 = vcmp.ge.s32.totalorder %v481_v56, 3006477107 }
  0x44   :  { %vm514_vm2 = vmpackc.low %vm255_vm1, %vm255_vm1 }
  0x97   :  { %v135_v18 = vpop.f32.mrf.mxu0 }
  0x98   :  { %v136_v19 = vadd.f32 %v582_v17, %v135_v18 }
  0x9a   :  { %v139_v20 = vmax.f32 %v136_v19, 0.0 }
  0x9c   :  { %v140_v21 = vpack.c.bf16 %v139_v20, %v139_v20 }
  0x9e   :  { %217 = vmatmul.bf16.vlgmr.msra.gmra.mxu1 %v140_v21 }
  0x9f   :  { %v137_v22 = vpop.f32.mrf.mxu0 }
 0x11b   :  { %v218_v57 = vpop.f32.mrf.mxu1 }
 0x11c   :  { %v219_v58 = vadd.f32 %v583_v55, %v218_v57 }
 0x11e   :  { %v222_v59 = vmax.f32 %v219_v58, 0.0 }
 0x120   :  { %v256_v60 = vmul.f32 1.25, %v222_v59 }
 0x122   :  { %v515_v61 = vpack.c.bf16 %v256_v60, %v256_v60 }
 0x123   :  { %v220_v62 = vpop.f32.mrf.mxu1 }
 0x124   :  { %516 = vmatmul.msk.bf16.vlgmr.msra.gmra.mxu2 %vm514_vm2, %v515_v61 }
 0x1a7   :  { %v336_v2 = vpop.f32.mrf.mxu2 }
 0x1a8   :  { %v337_v3 = vadd.f32 %v584_v1, %v336_v2 }
 0x1aa   :  { %v340_v4 = vmax.f32 %v337_v3, 0.0 }
 0x1ac   :  { %v341_v5 = vpack.c.bf16 %v340_v4, %v340_v4 }
 0x1ae   :  { %418 = vmatmul.bf16.vlgmr.msra.gmra.mxu3 %v341_v5 }
 0x1af   :  { %v338_v6 = vpop.f32.mrf.mxu2 }
 0x231   :  { %v419_v8 = vpop.f32.mrf.mxu3 }
 0x232   :  { %v420_v9 = vadd.f32 %v585_v7, %v419_v8 }
 0x234   :  { %424 = vst.msk [vmem:[#allocation13] sm:$0xff] %vm423_vm3, %v420_v9 }
 0x235   :  { %435 = dma.vmem_to_hbm [thread:$0]  %s431_s3, 128, %s433_s28, [#allocation6]  }
 0x239   :  { %v421_v10 = vpop.f32.mrf.mxu3 }
 0x23a   :  { %736 = dma.done.wait [#allocation6], 128  }
 0x23b   :  { %737 = vsyncadd [#allocation6], 4294967168 }
 0x23c   :  { %440 = vsyncpa [#allocation5], 1 }
 0x23d   :  { %441 = vsyncpa [#allocation8], 1 }
 0x23e   :  { %442 = vsyncpa [#allocation11], 1 }
 0x23f   :  { %443 = vsyncpa [#allocation6], 1 }

</bundles_post_ra>
